<compile_context>
chip_gen: v5e
topology: v5e:2x2
jax: 0.10.0
libtpu: 0.0.40
codegen_flags: <defaults>
</compile_context>

<pallas_src>
import jax
import jax.numpy as jnp
from jax.experimental import pallas as pl
from jax.experimental.pallas import tpu as pltpu

INPUT_SIZE = 25
HIDDEN_SIZE = 5
LANES = 128          # one 128-lane slab per gate
K_FUSED = 32         # 25 (x) + 5 (h) + 1 (bias one) + 1 (zero pad)


def lstm_cell_kernel(xh_ref, c_ref, w_ref, h_out_ref):
    """Fused LSTMCell step for one batch block, entirely in VMEM.

    xh_ref:    (bb, 32)       [x | h | 1 | 0]   (bias folded via the ones column)
    c_ref:     (bb, 128)      previous cell state in lanes 0:5, zeros elsewhere
    w_ref:     (32, 512)      fused [W_ih^T ; W_hh^T ; bias ; 0], one 128-lane slab / gate
    h_out_ref: (bb, 128)      new hidden state in lanes 0:5 (lane-dense slab store)
    """
    # Single MXU pass: x@W_ih^T + h@W_hh^T + (b_ih + b_hh), all at once.
    gates = jnp.dot(xh_ref[...], w_ref[...], preferred_element_type=jnp.float32)  # (bb, 512)

    # Gate slices land exactly on vreg (128-lane) boundaries -> no lane realignment.
    i_gate = jax.nn.sigmoid(gates[:, 0 * LANES:1 * LANES])
    f_gate = jax.nn.sigmoid(gates[:, 1 * LANES:2 * LANES])
    g_gate = jnp.tanh(gates[:, 2 * LANES:3 * LANES])
    o_gate = jax.nn.sigmoid(gates[:, 3 * LANES:4 * LANES])

    # Padded lanes: c = 0 and gate preacts = 0, so c_new = 0 and h = 0 there (never read).
    c_new = f_gate * c_ref[...] + i_gate * g_gate
    h_out_ref[...] = o_gate * jnp.tanh(c_new)


def lstm_cell_pallas(x, h0, c0, w_ih, w_hh, b_ih, b_hh):
    """Parameter plumbing / layout prep in plain JAX, LSTM math in one Pallas kernel."""
    B = x.shape[0]
    H = HIDDEN_SIZE

    x = jnp.asarray(x, jnp.float32)
    h0 = jnp.asarray(h0, jnp.float32)
    c0 = jnp.asarray(c0, jnp.float32)
    w_ih = jnp.asarray(w_ih, jnp.float32)    # (20, 25)
    w_hh = jnp.asarray(w_hh, jnp.float32)    # (20, 5)
    bias = jnp.asarray(b_ih, jnp.float32) + jnp.asarray(b_hh, jnp.float32)  # (20,)

    # ---- fused operand matrix: rows = [W_ih^T ; W_hh^T ; bias ; 0]  -> (32, 20) ----
    w_cat = jnp.concatenate(
        [w_ih.T, w_hh.T, bias[None, :], jnp.zeros((1, 4 * H), jnp.float32)], axis=0)

    # ---- scatter each gate's 5 columns onto its own 128-lane slab -> (32, 512) ----
    w_slab = jnp.zeros((K_FUSED, 4 * LANES), jnp.float32)
    for g in range(4):  # PyTorch gate order i, f, g, o
        w_slab = w_slab.at[:, g * LANES:g * LANES + H].set(w_cat[:, g * H:(g + 1) * H])

    # ---- batch tiling: sublane-aligned block, padded batch ----
    block_b = min(128, 8 * pl.cdiv(B, 8))
    B_pad = pl.cdiv(B, block_b) * block_b

    xh = jnp.zeros((B_pad, K_FUSED), jnp.float32)
    xh = xh.at[:B, :INPUT_SIZE].set(x)
    xh = xh.at[:B, INPUT_SIZE:INPUT_SIZE + H].set(h0)
    xh = xh.at[:B, INPUT_SIZE + H].set(1.0)                 # ones column -> bias row of w_slab

    c_pad = jnp.zeros((B_pad, LANES), jnp.float32)
    c_pad = c_pad.at[:B, :H].set(c0)

    grid = (B_pad // block_b,)
    out = pl.pallas_call(
        lstm_cell_kernel,
        out_shape=jax.ShapeDtypeStruct((B_pad, LANES), jnp.float32),
        grid_spec=pltpu.PrefetchScalarGridSpec(
            num_scalar_prefetch=0,
            grid=grid,
            in_specs=[
                pl.BlockSpec((block_b, K_FUSED), lambda i: (i, 0)),      # xh block
                pl.BlockSpec((block_b, LANES), lambda i: (i, 0)),        # c block
                pl.BlockSpec((K_FUSED, 4 * LANES), lambda i: (0, 0)),    # fused weights (shared)
            ],
            out_specs=pl.BlockSpec((block_b, LANES), lambda i: (i, 0)),
        ),
        compiler_params=pltpu.CompilerParams(
            dimension_semantics=("parallel",),                           # megacore-friendly
        ),
        cost_estimate=pl.CostEstimate(
            flops=2 * B_pad * K_FUSED * 4 * H,
            transcendentals=5 * B_pad * H,
            bytes_accessed=4 * (B_pad * K_FUSED + K_FUSED * 4 * LANES + 2 * B_pad * LANES),
        ),
    )(xh, c_pad, w_slab)

    return out[:B, :H]


def lstm_cell_ref(x, h0, c0, w_ih, w_hh, b_ih, b_hh):
    """Pure-JAX reference of torch.nn.LSTMCell for correctness checking."""
    gates = x @ w_ih.T + b_ih + h0 @ w_hh.T + b_hh
    i, f, g, o = jnp.split(gates, 4, axis=-1)
    i, f, o = jax.nn.sigmoid(i), jax.nn.sigmoid(f), jax.nn.sigmoid(o)
    g = jnp.tanh(g)
    c_new = f * c0 + i * g
    return o * jnp.tanh(c_new)


if __name__ == "__main__":
    key = jax.random.PRNGKey(0)
    k_x, k_h, k_c, k_wih, k_whh, k_bih, k_bhh = jax.random.split(key, 7)

    B = 8  # small, sublane-aligned batch
    # Module inputs: inp = (x, (h0, c0))
    x = jax.random.normal(k_x, (B, INPUT_SIZE), jnp.float32)
    h0 = jax.random.normal(k_h, (B, HIDDEN_SIZE), jnp.float32)
    c0 = jax.random.normal(k_c, (B, HIDDEN_SIZE), jnp.float32)

    # Deterministic parameter init (uniform(-1/sqrt(H), 1/sqrt(H)), like PyTorch).
    bound = 1.0 / (HIDDEN_SIZE ** 0.5)
    w_ih = jax.random.uniform(k_wih, (4 * HIDDEN_SIZE, INPUT_SIZE), jnp.float32, -bound, bound)
    w_hh = jax.random.uniform(k_whh, (4 * HIDDEN_SIZE, HIDDEN_SIZE), jnp.float32, -bound, bound)
    b_ih = jax.random.uniform(k_bih, (4 * HIDDEN_SIZE,), jnp.float32, -bound, bound)
    b_hh = jax.random.uniform(k_bhh, (4 * HIDDEN_SIZE,), jnp.float32, -bound, bound)

    out = lstm_cell_pallas(x, h0, c0, w_ih, w_hh, b_ih, b_hh)
    out = jax.block_until_ready(out)

    ref = lstm_cell_ref(x, h0, c0, w_ih, w_hh, b_ih, b_hh)
    assert out.shape == (B, HIDDEN_SIZE)
    assert jnp.allclose(out, ref, atol=1e-5, rtol=1e-5), "mismatch vs reference"

    print("KERNEL_OK")
</pallas_src>

<mosaic_0001>
module attributes {stable_mosaic.version = 11 : i64} {
  func.func @lstm_cell_kernel(%arg0: i32, %arg1: memref<8x32xf32, #tpu.memory_space<vmem>>, %arg2: memref<8x128xf32, #tpu.memory_space<vmem>>, %arg3: memref<32x512xf32, #tpu.memory_space<vmem>>, %arg4: memref<8x128xf32, #tpu.memory_space<vmem>>) attributes {dimension_semantics = [#tpu.dimension_semantics<parallel>], iteration_bounds = array<i64: 1>, scalar_prefetch = 0 : i64, scratch_operands = 0 : i64, tpu.core_type = #tpu.core_type<tc>, window_params = [{transform_indices = @transform_0, window_bounds = array<i64: 8, 32>}, {transform_indices = @transform_1, window_bounds = array<i64: 8, 128>}, {pipeline_mode = #tpu.pipeline_mode<synchronous>, transform_indices = @transform_2, window_bounds = array<i64: 32, 512>}, {transform_indices = @transform_3, window_bounds = array<i64: 8, 128>}]} {
    %c0 = arith.constant 0 : index
    %c0_0 = arith.constant 0 : index
    %0 = vector.load %arg1[%c0, %c0_0] : memref<8x32xf32, #tpu.memory_space<vmem>>, vector<8x32xf32>
    %c0_1 = arith.constant 0 : index
    %c0_2 = arith.constant 0 : index
    %1 = vector.load %arg3[%c0_1, %c0_2] : memref<32x512xf32, #tpu.memory_space<vmem>>, vector<32x512xf32>
    %cst = arith.constant dense<0.000000e+00> : vector<8x512xf32>
    %2 = tpu.matmul %0, %1, %cst {dimension_numbers = #tpu.dot_dimension_numbers<[1], [0], [0], [1], [0, 0, 1, 1], [], []>} : vector<8x32xf32>, vector<32x512xf32>, vector<8x512xf32> -> vector<8x512xf32>
    %3 = vector.extract_strided_slice %2 {offsets = [0, 0], sizes = [8, 128], strides = [1, 1]} : vector<8x512xf32> to vector<8x128xf32>
    %4 = arith.negf %3 : vector<8x128xf32>
    %5 = math.exp %4 : vector<8x128xf32>
    %cst_3 = arith.constant 1.000000e+00 : f32
    %6 = vector.broadcast %cst_3 : f32 to vector<8x128xf32>
    %7 = arith.addf %6, %5 : vector<8x128xf32>
    %8 = arith.divf %6, %7 : vector<8x128xf32>
    %9 = vector.extract_strided_slice %2 {offsets = [0, 128], sizes = [8, 128], strides = [1, 1]} : vector<8x512xf32> to vector<8x128xf32>
    %10 = arith.negf %9 : vector<8x128xf32>
    %11 = math.exp %10 : vector<8x128xf32>
    %cst_4 = arith.constant 1.000000e+00 : f32
    %12 = vector.broadcast %cst_4 : f32 to vector<8x128xf32>
    %13 = arith.addf %12, %11 : vector<8x128xf32>
    %14 = arith.divf %12, %13 : vector<8x128xf32>
    %15 = vector.extract_strided_slice %2 {offsets = [0, 256], sizes = [8, 128], strides = [1, 1]} : vector<8x512xf32> to vector<8x128xf32>
    %16 = math.tanh %15 : vector<8x128xf32>
    %17 = vector.extract_strided_slice %2 {offsets = [0, 384], sizes = [8, 128], strides = [1, 1]} : vector<8x512xf32> to vector<8x128xf32>
    %18 = arith.negf %17 : vector<8x128xf32>
    %19 = math.exp %18 : vector<8x128xf32>
    %cst_5 = arith.constant 1.000000e+00 : f32
    %20 = vector.broadcast %cst_5 : f32 to vector<8x128xf32>
    %21 = arith.addf %20, %19 : vector<8x128xf32>
    %22 = arith.divf %20, %21 : vector<8x128xf32>
    %c0_6 = arith.constant 0 : index
    %c0_7 = arith.constant 0 : index
    %23 = vector.load %arg2[%c0_6, %c0_7] : memref<8x128xf32, #tpu.memory_space<vmem>>, vector<8x128xf32>
    %24 = arith.mulf %14, %23 : vector<8x128xf32>
    %25 = arith.mulf %8, %16 : vector<8x128xf32>
    %26 = arith.addf %24, %25 : vector<8x128xf32>
    %27 = math.tanh %26 : vector<8x128xf32>
    %28 = arith.mulf %22, %27 : vector<8x128xf32>
    %c0_8 = arith.constant 0 : index
    %c0_9 = arith.constant 0 : index
    %29 = vector.load %arg4[%c0_8, %c0_9] : memref<8x128xf32, #tpu.memory_space<vmem>>, vector<8x128xf32>
    tpu.vector_store %arg4[%c0_8, %c0_9], %28 {strides = array<i32>} : memref<8x128xf32, #tpu.memory_space<vmem>>, vector<8x128xf32>,
    return
  }
  func.func @transform_0(%arg0: i32) -> (i32, i32) {
    %c0_i32 = arith.constant 0 : i32
    %c0_i32_0 = arith.constant 0 : i32
    return %arg0, %c0_i32 : i32, i32
  }
  func.func @transform_1(%arg0: i32) -> (i32, i32) {
    %c0_i32 = arith.constant 0 : i32
    %c0_i32_0 = arith.constant 0 : i32
    return %arg0, %c0_i32 : i32, i32
  }
  func.func @transform_2(%arg0: i32) -> (i32, i32) {
    %c0_i32 = arith.constant 0 : i32
    %c0_i32_0 = arith.constant 0 : i32
    %c0_i32_1 = arith.constant 0 : i32
    return %c0_i32, %c0_i32_0 : i32, i32
  }
  func.func @transform_3(%arg0: i32) -> (i32, i32) {
    %c0_i32 = arith.constant 0 : i32
    %c0_i32_0 = arith.constant 0 : i32
    return %arg0, %c0_i32 : i32, i32
  }
}

</mosaic_0001>

<bundles_post_ra>
// kernel: tpu_custom_call.1
= control target key start
LH: loop header
LB: loop body
LE: loop exit
PB: predicated region body
PF: predicated region fallthrough
CT: control target
= control target key end

     0   :  { %8 = vsyncpa [#allocation3], 0  ;;  %s411_s0 = inlined_call_operand.hbm [shape: f32[8,32], index: 0, kind: input, shape index: {}]   ;;  %s412_s1 = inlined_call_operand.hbm [shape: f32[8,128], index: 1, kind: input, shape index: {}]   ;;  %s413_s2 = inlined_call_operand.hbm [shape: f32[32,512], index: 2, kind: input, shape index: {}]   ;;  %s414_s3 = inlined_call_operand.hbm [shape: f32[8,128], index: 3, kind: output, shape index: {}]  }
   0x1   :  { %9 = vsyncpa [#allocation6], 0  ;;  %s27_s14 = sshll.u32 %s412_s1, 4  ;;  %s28_s14 = int_to_ptr.hbm [resolvable:$true] %s27_s14 }
   0x2   :  { %10 = vsyncpa [#allocation4], 0  ;;  %s373_s15 = smov [#allocation5]   ;;  %s16_s19 = sshll.u32 %s411_s0, 4  ;;  %s17_s19 = int_to_ptr.hbm [resolvable:$true] %s16_s19 }
   0x3   :  { %s29_s16 = sshll.u32 %s373_s15, 4  ;;  %s374_s20 = smov [#allocation2]   ;;  %s30_s16 = int_to_ptr.vmem [resolvable:$true] %s29_s16 }
   0x4   :  { %32 = dma.hbm_to_vmem [thread:$0]  %s28_s14, 128, %s30_s16, [#allocation6]  }
   0x5   :  { %s18_s21 = sshll.u32 %s374_s20, 4  ;;  %s37_s24 = sshll.u32 %s413_s2, 4  ;;  %s19_s21 = int_to_ptr.vmem [resolvable:$true] %s18_s21  ;;  %s38_s24 = int_to_ptr.hbm [resolvable:$true] %s37_s24 }
   0x6   :  { %21 = dma.hbm_to_vmem [thread:$0]  %s17_s19, 128, %s19_s21, [#allocation3]  }
   0x7   :  { %s375_s1 = smov [#allocation7]   ;;  %s376_s26 = smov 512  }
   0x8   :  { %s39_s25 = sshll.u32 %s375_s1, 4  ;;  %s377_s27 = smov 32   ;;  %s40_s25 = int_to_ptr.vmem [resolvable:$true] %s39_s25 }
   0x9   :  { %45 = dma.hbm_to_vmem [thread:$0]  %s38_s24, 2048, %s40_s25, [#allocation6], %s376_s26, %s376_s26, %s377_s27  }
   0xa   :  { %367 = dma.done.wait [#allocation3], 128  }
   0xb   :  { %368 = vsyncadd [#allocation3], 4294967168 }
   0xc   :  { %369 = dma.done.wait [#allocation6], 2176  }
   0xd   :  { %370 = vsyncadd [#allocation6], 4294965120  ;;  %v71_v0 = vld [vmem:[#allocation7 + $0x60] sm:$0xff]  ;;  %v72_v1 = vld [vmem:[#allocation7 + $0x68] sm:$0xff]  ;;  %vm75_vm0 = vcmask 261120   ;;  %s378_s0 = smov [#allocation8]  }
   0xe   :  { %v74_v2 = vld [vmem:[#allocation7 + $0x78] sm:$0xff]  ;;  %91 = vmatpush.msra.mxu0 %v71_v0  ;;  %111 = vmatpush.msra.mxu1 %v72_v1  ;;  %v67_v3 = vld [vmem:[#allocation7 + $0x40] sm:$0xff]  ;;  %v68_v4 = vld [vmem:[#allocation7 + $0x48] sm:$0xff]  ;;  %s229_s2 = sshll.u32 %s378_s0, 4  ;;  %s231_s30 = sshll.u32 %s414_s3, 4  ;;  %s230_s2 = int_to_ptr.vmem [resolvable:$true] %s229_s2  ;;  %s232_s30 = int_to_ptr.hbm [resolvable:$true] %s231_s30 }
   0xf   :  { %v70_v5 = vld [vmem:[#allocation7 + $0x58] sm:$0xff]  ;;  %151 = vmatpush.msra.mxu3 %v74_v2  ;;  %v63_v6 = vld [vmem:[#allocation7 + $0x20] sm:$0xff]  ;;  %v64_v7 = vld [vmem:[#allocation7 + $0x28] sm:$0xff] }
  0x10   :  { %92 = vmatpush.msra.mxu0 %v67_v3  ;;  %112 = vmatpush.msra.mxu1 %v68_v4  ;;  %v66_v8 = vld [vmem:[#allocation7 + $0x38] sm:$0xff]  ;;  %v59_v9 = vld [vmem:[#allocation7] sm:$0xff]  ;;  %v60_v10 = vld [vmem:[#allocation7 + $0x8] sm:$0xff] }
  0x11   :  { %152 = vmatpush.msra.mxu3 %v70_v5  ;;  %v73_v11 = vld [vmem:[#allocation7 + $0x70] sm:$0xff]  ;;  %v62_v12 = vld [vmem:[#allocation7 + $0x18] sm:$0xff] }
  0x12   :  { %93 = vmatpush.msra.mxu0 %v63_v6  ;;  %113 = vmatpush.msra.mxu1 %v64_v7  ;;  %v58_v13 = vld [vmem:[#allocation2] sm:$0xff]  ;;  %v217_v50 = vld [vmem:[#allocation5] sm:$0xff] }
  0x13   :  { %153 = vmatpush.msra.mxu3 %v66_v8  ;;  %131 = vmatpush.msra.mxu2 %v73_v11  ;;  %v69_v14 = vld [vmem:[#allocation7 + $0x50] sm:$0xff] }
  0x14   :  { %94 = vmatpush.msra.mxu0 %v59_v9  ;;  %114 = vmatpush.msra.mxu1 %v60_v10  ;;  %v65_v15 = vld [vmem:[#allocation7 + $0x30] sm:$0xff] }
  0x15   :  { %154 = vmatpush.msra.mxu3 %v62_v12  ;;  %242 = vmatmul.msk.f32.vlgmr.msra.gmra.mxu0 %vm75_vm0, %v58_v13  ;;  %v61_v16 = vld [vmem:[#allocation7 + $0x10] sm:$0xff] }
  0x16   :  { %243 = vmatmul.msk.f32.vlgmr.msra.gmra.mxu1 %vm75_vm0, %v58_v13  ;;  %245 = vmatmul.msk.f32.vlgmr.msra.gmra.mxu3 %vm75_vm0, %v58_v13 }
  0x17   :  { %132 = vmatpush.msra.mxu2 %v69_v14 }
  0x19   :  { %133 = vmatpush.msra.mxu2 %v65_v15 }
  0x1b   :  { %134 = vmatpush.msra.mxu2 %v61_v16 }
  0x1c   :  { %244 = vmatmul.msk.f32.vlgmr.msra.gmra.mxu2 %vm75_vm0, %v58_v13 }
  0x92   :  { %v96_v17 = vpop.f32.mrf.mxu0 }
  0x93   :  { %v246_v18 = vmul.f32 -1.442695, %v96_v17  ;;  %v116_v19 = vpop.f32.mrf.mxu1 }
  0x94   :  { %v247_v20 = vmul.f32 -1.442695, %v116_v19 }
  0x95   :  { %255 = vpow2.f32 %v246_v18 }
  0x96   :  { %257 = vpow2.f32 %v247_v20 }
  0x99   :  { %v156_v21 = vpop.f32.mrf.mxu3 }
  0x9a   :  { %v248_v22 = vmul.f32 -1.442695, %v156_v21 }
  0x9b   :  { %v256_v23 = vpop.eup %255 }
  0x9c   :  { %v258_v24 = vpop.eup %257  ;;  %v162_v25 = vadd.f32 1.0, %v256_v23  ;;  %259 = vpow2.f32 %v248_v22 }
  0x9d   :  { %v181_v26 = vadd.f32 1.0, %v258_v24 }
  0x9e   :  { %261 = vrcp.f32 %v162_v25  ;;  %v174_v36 = vand.u32 2147483648, %v162_v25  ;;  %v172_v39 = vand.u32 2147483647, %v162_v25  ;;  %vm168_vm3 = vweird.f32 %v162_v25 }
  0x9f   :  { %263 = vrcp.f32 %v181_v26  ;;  %v136_v29 = vpop.f32.mrf.mxu2  ;;  %v193_v37 = vand.u32 2147483648, %v181_v26  ;;  %v191_v41 = vand.u32 2147483647, %v181_v26  ;;  %vm187_vm4 = vweird.f32 %v181_v26 }
  0xa0   :  { %v175_v46 = vor.u32 1.1754944e-38, %v174_v36  ;;  %vm173_vm7 = vcmp.eq.f32.partialorder %v172_v39, 8.507059e+37 }
  0xa1   :  { %v194_v48 = vor.u32 1.1754944e-38, %v193_v37  ;;  %vm192_vm8 = vcmp.eq.f32.partialorder %v191_v41, 8.507059e+37 }
  0xa2   :  { %v260_v27 = vpop.eup %259 }
  0xa3   :  { %v201_v28 = vadd.f32 1.0, %v260_v27 }
  0xa4   :  { %v262_v30 = vpop.eup %261 }
  0xa5   :  { %v264_v31 = vpop.eup %263  ;;  %v164_v32 = vmul.f32 %v262_v30, %v162_v25  ;;  %265 = vrcp.f32 %v201_v28  ;;  %vm169_vm1 = vweird.f32 %v262_v30  ;;  %v213_v60 = vand.u32 2147483648, %v201_v28 }
  0xa6   :  { %v183_v33 = vmul.f32 %v264_v31, %v181_v26  ;;  %267 = vtanh.f32 %v136_v29  ;;  %vm188_vm2 = vweird.f32 %v264_v31  ;;  %vm170_vm5 = vmor %vm168_vm3, %vm169_vm1  ;;  %vm207_vm10 = vweird.f32 %v201_v28 }
  0xa7   :  { %v165_v34 = vsub.f32 1.0, %v164_v32  ;;  %vm189_vm6 = vmor %vm187_vm4, %vm188_vm2  ;;  %v211_v61 = vand.u32 2147483647, %v201_v28  ;;  %v214_v63 = vor.u32 1.1754944e-38, %v213_v60 }
  0xa8   :  { %v184_v35 = vsub.f32 1.0, %v183_v33 }
  0xa9   :  { %v166_v38 = vmul.f32 %v262_v30, %v165_v34  ;;  %vm212_vm12 = vcmp.eq.f32.partialorder %v211_v61, 8.507059e+37 }
  0xaa   :  { %v185_v40 = vmul.f32 %v264_v31, %v184_v35 }
  0xab   :  { %v266_v42 = vpop.eup %265  ;;  %v167_v43 = vadd.f32 %v262_v30, %v166_v38 }
  0xac   :  { %v268_v44 = vpop.eup %267  ;;  %v203_v45 = vmul.f32 %v266_v42, %v201_v28  ;;  %v186_v47 = vadd.f32 %v264_v31, %v185_v40  ;;  %vm208_vm9 = vweird.f32 %v266_v42 }
  0xad   :  { %v171_v49 = vsel %vm170_vm5, %v262_v30, %v167_v43  ;;  %vm209_vm11 = vmor %vm207_vm10, %vm208_vm9 }
  0xae   :  { %v204_v51 = vsub.f32 1.0, %v203_v45  ;;  %v176_v52 = vsel %vm173_vm7, %v175_v46, %v171_v49  ;;  %v190_v53 = vsel %vm189_vm6, %v264_v31, %v186_v47 }
  0xaf   :  { %v195_v54 = vsel %vm192_vm8, %v194_v48, %v190_v53  ;;  %v219_v55 = vmul.f32 %v268_v44, %v176_v52 }
  0xb0   :  { %v218_v56 = vmul.f32 %v217_v50, %v195_v54  ;;  %v205_v57 = vmul.f32 %v266_v42, %v204_v51 }
  0xb2   :  { %v220_v58 = vadd.f32 %v219_v55, %v218_v56  ;;  %v206_v59 = vadd.f32 %v266_v42, %v205_v57 }
  0xb4   :  { %269 = vtanh.f32 %v220_v58  ;;  %v210_v62 = vsel %vm209_vm11, %v266_v42, %v206_v59 }
  0xb5   :  { %v215_v1 = vsel %vm212_vm12, %v214_v63, %v210_v62 }
  0xba   :  { %v270_v0 = vpop.eup %269 }
  0xbb   :  { %v222_v2 = vmul.f32 %v270_v0, %v215_v1 }
  0xbd   :  { %223 = vst [vmem:[#allocation8] sm:$0xff] %v222_v2 }
  0xbe   :  { %234 = dma.vmem_to_hbm [thread:$0]  %s230_s2, 128, %s232_s30, [#allocation4]  }
  0xbf   :  { %371 = dma.done.wait [#allocation4], 128  }
  0xc0   :  { %372 = vsyncadd [#allocation4], 4294967168 }
  0xc1   :  { %239 = vsyncpa [#allocation3], 1 }
  0xc2   :  { %240 = vsyncpa [#allocation6], 1 }
  0xc3   :  { %241 = vsyncpa [#allocation4], 1 }

</bundles_post_ra>
